<compile_context>
chip_gen: v7x
topology: tpu7x:2x2x1
jax: 0.10.0
libtpu: 0.0.40
codegen_flags: <defaults>
</compile_context>

<pallas_src>
import functools

import jax
import jax.numpy as jnp
from jax import lax
from jax.experimental import pallas as pl
from jax.experimental.pallas import tpu as pltpu


def _residual_block_kernel(x_ref, mu_ref, md_ref,
                           wm1_ref, b1_ref, g1_ref, be1_ref, a_ref,
                           wm2_ref, b2_ref, g2_ref, be2_ref,
                           out_ref, *, eps, chan, inv_count):
    """Single-program kernel; lane-dense layout, everything resident in VMEM.

    x_ref     : (R, L) = (B*H, W*C) f32 activations
    mu_ref    : (R, 1) mask, 1.0 where row h-1 exists within the same image
    md_ref    : (R, 1) mask, 1.0 where row h+1 exists within the same image
    wm*_ref   : (3L, L) stacked banded conv matrices (kh = 0,1,2 row blocks)
    b*/g*/be* : (1, L) bias / BN gamma / BN beta, tiled over W on the lane axis
    a_ref     : (1, 1) PReLU slope (SMEM scalar)
    out_ref   : (R, L)
    """
    f32 = jnp.float32
    x = x_ref[...]
    mask_up = mu_ref[...]
    mask_dn = md_ref[...]
    R, L = x.shape

    def chan_mean(v):
        # Per-channel mean over (B,H,W): v is a (1, L) row of per-(w,c) column
        # sums; a lane roll-tree (stride = C) sums over W cyclically (XLU only).
        step = chan
        while step < L:
            v = v + pltpu.roll(v, step, 1)
            step *= 2
        return v * inv_count

    def conv3x3(t, wm_ref, b_lane):
        # Row halo on the XLU (roll +/-1 sublane, zero image-boundary rows);
        # the W halo (zero padding) is encoded in the band structure of wm.
        up = pltpu.roll(t, 1, 0) * mask_up        # t at h-1 (0 at h == 0)
        dn = pltpu.roll(t, R - 1, 0) * mask_dn    # t at h+1 (0 at h == H-1)
        # One fused MXU pass: (R, 3L) @ (3L, L).
        lhs = jnp.concatenate([up, t, dn], axis=1)
        return jnp.dot(lhs, wm_ref[...], preferred_element_type=f32) + b_lane

    def batchnorm(y, g_lane, be_lane):
        # Single-pass biased batch stats (PyTorch training mode), folded affine.
        mean = chan_mean(jnp.sum(y, axis=0, keepdims=True))
        mean_sq = chan_mean(jnp.sum(y * y, axis=0, keepdims=True))
        var = mean_sq - mean * mean
        s = g_lane * lax.rsqrt(var + eps)
        t = be_lane - mean * s
        return y * s + t

    # conv1 -> BN1 -> PReLU
    y = conv3x3(x, wm1_ref, b1_ref[...])
    y = batchnorm(y, g1_ref[...], be1_ref[...])
    alpha = a_ref[0, 0]
    y = jnp.where(y >= 0.0, y, alpha * y)

    # conv2 -> BN2
    y = conv3x3(y, wm2_ref, b2_ref[...])
    y = batchnorm(y, g2_ref[...], be2_ref[...])

    # residual add; fully lane-dense (R, L) store
    out_ref[...] = x + y


def _band_weights_stacked(w_hwio, Wd, C):
    """(3,3,C,C) HWIO conv weight -> (3*Wd*C, Wd*C) stacked banded matrices."""
    mats = []
    for kh in range(3):
        m = sum(jnp.kron(jnp.eye(Wd, k=-(kw - 1), dtype=jnp.float32),
                         w_hwio[kh, kw].astype(jnp.float32))
                for kw in range(3))
        mats.append(m)
    return jnp.concatenate(mats, axis=0)


def make_residual_block(params, B, C, H, W):
    """Builds operator constants ONCE and returns (apply_nchw, apply_nhwc)."""
    w1, b1, g1, be1, a, w2, b2, g2, be2 = params
    R, L = B * H, W * C
    assert W > 0 and (W & (W - 1)) == 0, "roll-tree BN pooling assumes power-of-two W"
    # TODO(synk): general-W fallback (binary-decomposed roll tree or averaging matmul).

    # Constant operators (built eagerly, reused across calls).
    wm1 = _band_weights_stacked(w1, W, C)                    # (3L, L)
    wm2 = _band_weights_stacked(w2, W, C)                    # (3L, L)
    h_idx = jnp.arange(R, dtype=jnp.int32) % H
    mask_up = (h_idx > 0).astype(jnp.float32).reshape(R, 1)
    mask_dn = (h_idx < H - 1).astype(jnp.float32).reshape(R, 1)

    def lane(v):        # (C,) -> (1, W*C), value at lane w*C + c is v[c]
        return jnp.tile(v.astype(jnp.float32), W).reshape(1, L)

    b1_l, g1_l, be1_l = lane(b1), lane(g1), lane(be1)
    b2_l, g2_l, be2_l = lane(b2), lane(g2), lane(be2)
    a_s = jnp.asarray(a, jnp.float32).reshape(1, 1)

    vmem = pl.BlockSpec(memory_space=pltpu.MemorySpace.VMEM)
    smem = pl.BlockSpec(memory_space=pltpu.MemorySpace.SMEM)
    kernel = functools.partial(_residual_block_kernel, eps=0.8, chan=C,
                               inv_count=1.0 / float(R * W))

    call = pl.pallas_call(
        kernel,
        out_shape=jax.ShapeDtypeStruct((R, L), jnp.float32),
        in_specs=[vmem, vmem, vmem,          # x, mask_up, mask_dn
                  vmem, vmem, vmem, vmem,    # wm1, b1, gamma1, beta1
                  smem,                      # prelu slope
                  vmem, vmem, vmem, vmem],   # wm2, b2, gamma2, beta2
        out_specs=vmem,
        compiler_params=pltpu.CompilerParams(vmem_limit_bytes=32 * 1024 * 1024),
    )

    @jax.jit
    def apply_nhwc(x_nhwc):
        """(B,H,W,C) -> (B,H,W,C); no layout transpose on the hot path."""
        x2 = x_nhwc.astype(jnp.float32).reshape(R, L)
        out2 = call(x2, mask_up, mask_dn,
                    wm1, b1_l, g1_l, be1_l, a_s,
                    wm2, b2_l, g2_l, be2_l)
        return out2.reshape(B, H, W, C)

    @jax.jit
    def apply_nchw(x_nchw):
        """(B,C,H,W) -> (B,C,H,W); matches the PyTorch module interface."""
        out = apply_nhwc(jnp.transpose(x_nchw, (0, 2, 3, 1)))
        return jnp.transpose(out, (0, 3, 1, 2))

    return apply_nchw, apply_nhwc


def residual_block_ref(x_nchw, params):
    """Pure-JAX reference (same math) for correctness checking."""
    w1, b1, g1, be1, a, w2, b2, g2, be2 = params
    x = jnp.transpose(x_nchw, (0, 2, 3, 1)).astype(jnp.float32)

    def conv(h, w, b):
        y = lax.conv_general_dilated(
            h, w, window_strides=(1, 1), padding="SAME",
            dimension_numbers=("NHWC", "HWIO", "NHWC"))
        return y + b

    def bn(y, g, be):
        mean = jnp.mean(y, axis=(0, 1, 2), keepdims=True)
        var = jnp.mean((y - mean) ** 2, axis=(0, 1, 2), keepdims=True)
        return (y - mean) * lax.rsqrt(var + 0.8) * g + be

    y = bn(conv(x, w1, b1), g1, be1)
    y = jnp.where(y >= 0.0, y, a * y)
    y = bn(conv(y, w2, b2), g2, be2)
    return jnp.transpose(x + y, (0, 3, 1, 2))


def init_params(key, C):
    """Deterministic synthetic parameters (shapes as in the nn.Module)."""
    ks = jax.random.split(key, 4)
    scale = 1.0 / jnp.sqrt(9.0 * C)            # ~ PyTorch conv default range
    w1 = jax.random.uniform(ks[0], (3, 3, C, C), jnp.float32, -scale, scale)
    b1 = jax.random.uniform(ks[1], (C,), jnp.float32, -scale, scale)
    w2 = jax.random.uniform(ks[2], (3, 3, C, C), jnp.float32, -scale, scale)
    b2 = jax.random.uniform(ks[3], (C,), jnp.float32, -scale, scale)
    g1 = jnp.ones((C,), jnp.float32)
    be1 = jnp.zeros((C,), jnp.float32)
    g2 = jnp.ones((C,), jnp.float32)
    be2 = jnp.zeros((C,), jnp.float32)
    a = jnp.asarray(0.25, jnp.float32)          # nn.PReLU() default slope
    return (w1, b1, g1, be1, a, w2, b2, g2, be2)


if __name__ == "__main__":
    key = jax.random.PRNGKey(0)
    k_x, k_p = jax.random.split(key)

    B, C, H, W = 2, 8, 16, 16                   # small NCHW input (W*C = 128 lanes)
    x = jax.random.normal(k_x, (B, C, H, W), jnp.float32)
    params = init_params(k_p, C)

    apply_nchw, _ = make_residual_block(params, B, C, H, W)
    out = jax.block_until_ready(apply_nchw(x))

    ref = residual_block_ref(x, params)
    assert out.shape == (B, C, H, W)
    assert jnp.allclose(out, ref, rtol=1e-4, atol=1e-4), "mismatch vs JAX reference"

    print("KERNEL_OK")
</pallas_src>

<mosaic_0001>
module attributes {stable_mosaic.version = 11 : i64} {
  func.func @_residual_block_kernel(%arg0: memref<32x128xf32, #tpu.memory_space<vmem>>, %arg1: memref<32x1xf32, #tpu.memory_space<vmem>>, %arg2: memref<32x1xf32, #tpu.memory_space<vmem>>, %arg3: memref<384x128xf32, #tpu.memory_space<vmem>>, %arg4: memref<1x128xf32, #tpu.memory_space<vmem>>, %arg5: memref<1x128xf32, #tpu.memory_space<vmem>>, %arg6: memref<1x128xf32, #tpu.memory_space<vmem>>, %arg7: memref<1x1xf32, #tpu.memory_space<smem>>, %arg8: memref<384x128xf32, #tpu.memory_space<vmem>>, %arg9: memref<1x128xf32, #tpu.memory_space<vmem>>, %arg10: memref<1x128xf32, #tpu.memory_space<vmem>>, %arg11: memref<1x128xf32, #tpu.memory_space<vmem>>, %arg12: memref<32x128xf32, #tpu.memory_space<vmem>>) attributes {dimension_semantics = [], scalar_prefetch = 0 : i64, scratch_operands = 0 : i64, tpu.core_type = #tpu.core_type<tc>} {
    %c0 = arith.constant 0 : index
    %c0_0 = arith.constant 0 : index
    %0 = vector.load %arg0[%c0, %c0_0] : memref<32x128xf32, #tpu.memory_space<vmem>>, vector<32x128xf32>
    %c0_1 = arith.constant 0 : index
    %c0_2 = arith.constant 0 : index
    %1 = vector.load %arg1[%c0_1, %c0_2] : memref<32x1xf32, #tpu.memory_space<vmem>>, vector<32x1xf32>
    %c0_3 = arith.constant 0 : index
    %c0_4 = arith.constant 0 : index
    %2 = vector.load %arg2[%c0_3, %c0_4] : memref<32x1xf32, #tpu.memory_space<vmem>>, vector<32x1xf32>
    %c0_5 = arith.constant 0 : index
    %c0_6 = arith.constant 0 : index
    %3 = vector.load %arg4[%c0_5, %c0_6] : memref<1x128xf32, #tpu.memory_space<vmem>>, vector<1x128xf32>
    %c1_i32 = arith.constant 1 : i32
    %4 = tpu.dynamic_rotate %0 by %c1_i32 dim 0 : vector<32x128xf32>, i32 -> vector<32x128xf32>
    %5 = vector.broadcast %1 : vector<32x1xf32> to vector<32x128xf32>
    %6 = arith.mulf %4, %5 : vector<32x128xf32>
    %c31_i32 = arith.constant 31 : i32
    %7 = tpu.dynamic_rotate %0 by %c31_i32 dim 0 : vector<32x128xf32>, i32 -> vector<32x128xf32>
    %8 = vector.broadcast %2 : vector<32x1xf32> to vector<32x128xf32>
    %9 = arith.mulf %7, %8 : vector<32x128xf32>
    %10 = tpu.concatenate %6, %0, %9 in 1 : vector<32x128xf32>, vector<32x128xf32>, vector<32x128xf32> -> vector<32x384xf32>
    %c0_7 = arith.constant 0 : index
    %c0_8 = arith.constant 0 : index
    %11 = vector.load %arg3[%c0_7, %c0_8] : memref<384x128xf32, #tpu.memory_space<vmem>>, vector<384x128xf32>
    %cst = arith.constant dense<0.000000e+00> : vector<32x128xf32>
    %12 = tpu.matmul %10, %11, %cst {dimension_numbers = #tpu.dot_dimension_numbers<[1], [0], [0], [1], [0, 0, 1, 1], [], []>} : vector<32x384xf32>, vector<384x128xf32>, vector<32x128xf32> -> vector<32x128xf32>
    %13 = vector.broadcast %3 : vector<1x128xf32> to vector<32x128xf32>
    %14 = arith.addf %12, %13 : vector<32x128xf32>
    %c0_9 = arith.constant 0 : index
    %c0_10 = arith.constant 0 : index
    %15 = vector.load %arg5[%c0_9, %c0_10] : memref<1x128xf32, #tpu.memory_space<vmem>>, vector<1x128xf32>
    %c0_11 = arith.constant 0 : index
    %c0_12 = arith.constant 0 : index
    %16 = vector.load %arg6[%c0_11, %c0_12] : memref<1x128xf32, #tpu.memory_space<vmem>>, vector<1x128xf32>
    %cst_13 = arith.constant dense<0.000000e+00> : vector<128xf32>
    %17 = vector.multi_reduction <add>, %14, %cst_13 [0] : vector<32x128xf32> to vector<128xf32>
    %18 = vector.shape_cast %17 : vector<128xf32> to vector<1x128xf32>
    %c8_i32 = arith.constant 8 : i32
    %19 = tpu.dynamic_rotate %18 by %c8_i32 dim 1 : vector<1x128xf32>, i32 -> vector<1x128xf32>
    %20 = arith.addf %18, %19 : vector<1x128xf32>
    %c16_i32 = arith.constant 16 : i32
    %21 = tpu.dynamic_rotate %20 by %c16_i32 dim 1 : vector<1x128xf32>, i32 -> vector<1x128xf32>
    %22 = arith.addf %20, %21 : vector<1x128xf32>
    %c32_i32 = arith.constant 32 : i32
    %23 = tpu.dynamic_rotate %22 by %c32_i32 dim 1 : vector<1x128xf32>, i32 -> vector<1x128xf32>
    %24 = arith.addf %22, %23 : vector<1x128xf32>
    %c64_i32 = arith.constant 64 : i32
    %25 = tpu.dynamic_rotate %24 by %c64_i32 dim 1 : vector<1x128xf32>, i32 -> vector<1x128xf32>
    %26 = arith.addf %24, %25 : vector<1x128xf32>
    %cst_14 = arith.constant 0.001953125 : f32
    %27 = vector.broadcast %cst_14 : f32 to vector<1x128xf32>
    %28 = arith.mulf %26, %27 : vector<1x128xf32>
    %29 = arith.mulf %14, %14 : vector<32x128xf32>
    %cst_15 = arith.constant dense<0.000000e+00> : vector<128xf32>
    %30 = vector.multi_reduction <add>, %29, %cst_15 [0] : vector<32x128xf32> to vector<128xf32>
    %31 = vector.shape_cast %30 : vector<128xf32> to vector<1x128xf32>
    %c8_i32_16 = arith.constant 8 : i32
    %32 = tpu.dynamic_rotate %31 by %c8_i32_16 dim 1 : vector<1x128xf32>, i32 -> vector<1x128xf32>
    %33 = arith.addf %31, %32 : vector<1x128xf32>
    %c16_i32_17 = arith.constant 16 : i32
    %34 = tpu.dynamic_rotate %33 by %c16_i32_17 dim 1 : vector<1x128xf32>, i32 -> vector<1x128xf32>
    %35 = arith.addf %33, %34 : vector<1x128xf32>
    %c32_i32_18 = arith.constant 32 : i32
    %36 = tpu.dynamic_rotate %35 by %c32_i32_18 dim 1 : vector<1x128xf32>, i32 -> vector<1x128xf32>
    %37 = arith.addf %35, %36 : vector<1x128xf32>
    %c64_i32_19 = arith.constant 64 : i32
    %38 = tpu.dynamic_rotate %37 by %c64_i32_19 dim 1 : vector<1x128xf32>, i32 -> vector<1x128xf32>
    %39 = arith.addf %37, %38 : vector<1x128xf32>
    %cst_20 = arith.constant 0.001953125 : f32
    %40 = vector.broadcast %cst_20 : f32 to vector<1x128xf32>
    %41 = arith.mulf %39, %40 : vector<1x128xf32>
    %42 = arith.mulf %28, %28 : vector<1x128xf32>
    %43 = arith.subf %41, %42 : vector<1x128xf32>
    %cst_21 = arith.constant 8.000000e-01 : f32
    %44 = vector.broadcast %cst_21 : f32 to vector<1x128xf32>
    %45 = arith.addf %43, %44 : vector<1x128xf32>
    %46 = math.rsqrt %45 : vector<1x128xf32>
    %47 = arith.mulf %15, %46 : vector<1x128xf32>
    %48 = arith.mulf %28, %47 : vector<1x128xf32>
    %49 = arith.subf %16, %48 : vector<1x128xf32>
    %50 = vector.broadcast %47 : vector<1x128xf32> to vector<32x128xf32>
    %51 = arith.mulf %14, %50 : vector<32x128xf32>
    %52 = vector.broadcast %49 : vector<1x128xf32> to vector<32x128xf32>
    %53 = arith.addf %51, %52 : vector<32x128xf32>
    %c0_22 = arith.constant 0 : index
    %c0_23 = arith.constant 0 : index
    %54 = memref.load %arg7[%c0_22, %c0_23] : memref<1x1xf32, #tpu.memory_space<smem>>
    %cst_24 = arith.constant 0.000000e+00 : f32
    %55 = vector.broadcast %cst_24 : f32 to vector<32x128xf32>
    %56 = arith.cmpf oge, %53, %55 : vector<32x128xf32>
    %57 = vector.broadcast %54 : f32 to vector<32x128xf32>
    %58 = arith.mulf %57, %53 : vector<32x128xf32>
    %59 = arith.select %56, %53, %58 : vector<32x128xi1>, vector<32x128xf32>
    %c0_25 = arith.constant 0 : index
    %c0_26 = arith.constant 0 : index
    %60 = vector.load %arg9[%c0_25, %c0_26] : memref<1x128xf32, #tpu.memory_space<vmem>>, vector<1x128xf32>
    %c1_i32_27 = arith.constant 1 : i32
    %61 = tpu.dynamic_rotate %59 by %c1_i32_27 dim 0 : vector<32x128xf32>, i32 -> vector<32x128xf32>
    %62 = vector.broadcast %1 : vector<32x1xf32> to vector<32x128xf32>
    %63 = arith.mulf %61, %62 : vector<32x128xf32>
    %c31_i32_28 = arith.constant 31 : i32
    %64 = tpu.dynamic_rotate %59 by %c31_i32_28 dim 0 : vector<32x128xf32>, i32 -> vector<32x128xf32>
    %65 = vector.broadcast %2 : vector<32x1xf32> to vector<32x128xf32>
    %66 = arith.mulf %64, %65 : vector<32x128xf32>
    %67 = tpu.concatenate %63, %59, %66 in 1 : vector<32x128xf32>, vector<32x128xf32>, vector<32x128xf32> -> vector<32x384xf32>
    %c0_29 = arith.constant 0 : index
    %c0_30 = arith.constant 0 : index
    %68 = vector.load %arg8[%c0_29, %c0_30] : memref<384x128xf32, #tpu.memory_space<vmem>>, vector<384x128xf32>
    %cst_31 = arith.constant dense<0.000000e+00> : vector<32x128xf32>
    %69 = tpu.matmul %67, %68, %cst_31 {dimension_numbers = #tpu.dot_dimension_numbers<[1], [0], [0], [1], [0, 0, 1, 1], [], []>} : vector<32x384xf32>, vector<384x128xf32>, vector<32x128xf32> -> vector<32x128xf32>
    %70 = vector.broadcast %60 : vector<1x128xf32> to vector<32x128xf32>
    %71 = arith.addf %69, %70 : vector<32x128xf32>
    %c0_32 = arith.constant 0 : index
    %c0_33 = arith.constant 0 : index
    %72 = vector.load %arg10[%c0_32, %c0_33] : memref<1x128xf32, #tpu.memory_space<vmem>>, vector<1x128xf32>
    %c0_34 = arith.constant 0 : index
    %c0_35 = arith.constant 0 : index
    %73 = vector.load %arg11[%c0_34, %c0_35] : memref<1x128xf32, #tpu.memory_space<vmem>>, vector<1x128xf32>
    %cst_36 = arith.constant dense<0.000000e+00> : vector<128xf32>
    %74 = vector.multi_reduction <add>, %71, %cst_36 [0] : vector<32x128xf32> to vector<128xf32>
    %75 = vector.shape_cast %74 : vector<128xf32> to vector<1x128xf32>
    %c8_i32_37 = arith.constant 8 : i32
    %76 = tpu.dynamic_rotate %75 by %c8_i32_37 dim 1 : vector<1x128xf32>, i32 -> vector<1x128xf32>
    %77 = arith.addf %75, %76 : vector<1x128xf32>
    %c16_i32_38 = arith.constant 16 : i32
    %78 = tpu.dynamic_rotate %77 by %c16_i32_38 dim 1 : vector<1x128xf32>, i32 -> vector<1x128xf32>
    %79 = arith.addf %77, %78 : vector<1x128xf32>
    %c32_i32_39 = arith.constant 32 : i32
    %80 = tpu.dynamic_rotate %79 by %c32_i32_39 dim 1 : vector<1x128xf32>, i32 -> vector<1x128xf32>
    %81 = arith.addf %79, %80 : vector<1x128xf32>
    %c64_i32_40 = arith.constant 64 : i32
    %82 = tpu.dynamic_rotate %81 by %c64_i32_40 dim 1 : vector<1x128xf32>, i32 -> vector<1x128xf32>
    %83 = arith.addf %81, %82 : vector<1x128xf32>
    %cst_41 = arith.constant 0.001953125 : f32
    %84 = vector.broadcast %cst_41 : f32 to vector<1x128xf32>
    %85 = arith.mulf %83, %84 : vector<1x128xf32>
    %86 = arith.mulf %71, %71 : vector<32x128xf32>
    %cst_42 = arith.constant dense<0.000000e+00> : vector<128xf32>
    %87 = vector.multi_reduction <add>, %86, %cst_42 [0] : vector<32x128xf32> to vector<128xf32>
    %88 = vector.shape_cast %87 : vector<128xf32> to vector<1x128xf32>
    %c8_i32_43 = arith.constant 8 : i32
    %89 = tpu.dynamic_rotate %88 by %c8_i32_43 dim 1 : vector<1x128xf32>, i32 -> vector<1x128xf32>
    %90 = arith.addf %88, %89 : vector<1x128xf32>
    %c16_i32_44 = arith.constant 16 : i32
    %91 = tpu.dynamic_rotate %90 by %c16_i32_44 dim 1 : vector<1x128xf32>, i32 -> vector<1x128xf32>
    %92 = arith.addf %90, %91 : vector<1x128xf32>
    %c32_i32_45 = arith.constant 32 : i32
    %93 = tpu.dynamic_rotate %92 by %c32_i32_45 dim 1 : vector<1x128xf32>, i32 -> vector<1x128xf32>
    %94 = arith.addf %92, %93 : vector<1x128xf32>
    %c64_i32_46 = arith.constant 64 : i32
    %95 = tpu.dynamic_rotate %94 by %c64_i32_46 dim 1 : vector<1x128xf32>, i32 -> vector<1x128xf32>
    %96 = arith.addf %94, %95 : vector<1x128xf32>
    %cst_47 = arith.constant 0.001953125 : f32
    %97 = vector.broadcast %cst_47 : f32 to vector<1x128xf32>
    %98 = arith.mulf %96, %97 : vector<1x128xf32>
    %99 = arith.mulf %85, %85 : vector<1x128xf32>
    %100 = arith.subf %98, %99 : vector<1x128xf32>
    %cst_48 = arith.constant 8.000000e-01 : f32
    %101 = vector.broadcast %cst_48 : f32 to vector<1x128xf32>
    %102 = arith.addf %100, %101 : vector<1x128xf32>
    %103 = math.rsqrt %102 : vector<1x128xf32>
    %104 = arith.mulf %72, %103 : vector<1x128xf32>
    %105 = arith.mulf %85, %104 : vector<1x128xf32>
    %106 = arith.subf %73, %105 : vector<1x128xf32>
    %107 = vector.broadcast %104 : vector<1x128xf32> to vector<32x128xf32>
    %108 = arith.mulf %71, %107 : vector<32x128xf32>
    %109 = vector.broadcast %106 : vector<1x128xf32> to vector<32x128xf32>
    %110 = arith.addf %108, %109 : vector<32x128xf32>
    %111 = arith.addf %0, %110 : vector<32x128xf32>
    %c0_49 = arith.constant 0 : index
    %c0_50 = arith.constant 0 : index
    %112 = vector.load %arg12[%c0_49, %c0_50] : memref<32x128xf32, #tpu.memory_space<vmem>>, vector<32x128xf32>
    tpu.vector_store %arg12[%c0_49, %c0_50], %111 {strides = array<i32>} : memref<32x128xf32, #tpu.memory_space<vmem>>, vector<32x128xf32>,
    return
  }
}

</mosaic_0001>

<bundles_post_ra>
// kernel: apply_nhwc.1
= control target key start
LH: loop header
LB: loop body
LE: loop exit
PB: predicated region body
PF: predicated region fallthrough
CT: control target
= control target key end

     0   :  { %v1121_v0 = vmov 0   ;;  %s1123_s24 = smov 16   ;;  %s1124_s25 = smov 32   ;;  %s1713_s1 = inlined_call_operand.vmem [shape: f32[32,1], index: 1, kind: input, shape index: {}]   ;;  %s1714_s2 = inlined_call_operand.vmem [shape: f32[32,1], index: 2, kind: input, shape index: {}]   ;;  %s1715_s3 = inlined_call_operand.vmem [shape: f32[384,128], index: 3, kind: input, shape index: {}]   ;;  %s1716_s0 = inlined_call_operand.vmem [shape: f32[32,128], index: 0, kind: input, shape index: {}]   ;;  %s1717_s4 = inlined_call_operand.vmem [shape: f32[1,128], index: 4, kind: input, shape index: {}]   ;;  %s1718_s8 = inlined_call_operand.vmem [shape: f32[384,128], index: 8, kind: input, shape index: {}]   ;;  %s1719_s5 = inlined_call_operand.vmem [shape: f32[1,128], index: 5, kind: input, shape index: {}, may-alias: {5,10}]   ;;  %s1720_s6 = inlined_call_operand.vmem [shape: f32[1,128], index: 6, kind: input, shape index: {}, may-alias: {6,11}]   ;;  %s1721_s7 = inlined_call_operand.<no memory space> [shape: f32[1,1], index: 7, kind: input, shape index: {}]   ;;  %s1722_s9 = inlined_call_operand.vmem [shape: f32[1,128], index: 9, kind: input, shape index: {}]   ;;  %s1723_s10 = inlined_call_operand.vmem [shape: f32[1,128], index: 10, kind: input, shape index: {}, may-alias: {5,10}]   ;;  %s1724_s11 = inlined_call_operand.vmem [shape: f32[1,128], index: 11, kind: input, shape index: {}, may-alias: {6,11}]   ;;  %s1725_s12 = inlined_call_operand.vmem [shape: f32[32,128], index: 12, kind: output, shape index: {}]  }
   0x1   :  { %1116 = vset.pattern.permute.xlu1 %v1121_v0  ;;  %1115 = vset.pattern.permute.xlu0 %v1121_v0  ;;  %v48_v1 = vld [vmem:[%s1713_s1 + $0x10] sm:$0xff]  ;;  %v46_v2 = vld [vmem:[%s1713_s1] sm:$0xff]  ;;  %v47_v4 = vld [vmem:[%s1713_s1 + $0x8] sm:$0xff]  ;;  %s1125_s15 = smov 64  }
   0x2   :  { %78 = vperm.xlu1 %1116, %v48_v1   ;;  %68 = vperm.xlu0 %1115, %v46_v2   ;;  %v50_v3 = vld [vmem:[%s1714_s2] sm:$0xff]  ;;  %v140_v6 = vld [vmem:[%s1715_s3 + $0x88] sm:$0xff]  ;;  %v49_v9 = vld [vmem:[%s1713_s1 + $0x18] sm:$0xff] }
   0x3   :  { %v139_v5 = vld [vmem:[%s1715_s3 + $0x80] sm:$0xff]  ;;  %v124_v8 = vld [vmem:[%s1715_s3 + $0x8] sm:$0xff]  ;;  %v141_v12 = vld [vmem:[%s1715_s3 + $0x90] sm:$0xff] }
   0x4   :  { %v123_v7 = vld [vmem:[%s1715_s3] sm:$0xff]  ;;  %v982_v10 = vpack.c.bf16 %v140_v6, %v139_v5  ;;  %v142_v13 = vld [vmem:[%s1715_s3 + $0x98] sm:$0xff]  ;;  %v125_v14 = vld [vmem:[%s1715_s3 + $0x10] sm:$0xff] }
   0x5   :  { %v984_v11 = vpack.c.bf16 %v124_v8, %v123_v7  ;;  %v986_v15 = vpack.c.bf16 %v142_v13, %v141_v12  ;;  %v126_v16 = vld [vmem:[%s1715_s3 + $0x18] sm:$0xff]  ;;  %v143_v17 = vld [vmem:[%s1715_s3 + $0xa0] sm:$0xff]  ;;  %v144_v18 = vld [vmem:[%s1715_s3 + $0xa8] sm:$0xff] }
   0x6   :  { %101 = vperm.xlu1 %1116, %v50_v3   ;;  %73 = vperm.xlu0 %1115, %v47_v4   ;;  %v51_v19 = vld [vmem:[%s1714_s2 + $0x8] sm:$0xff]  ;;  %v155_v20 = vld [vmem:[%s1715_s3 + $0x100] sm:$0xff]  ;;  %v988_v22 = vpack.c.bf16 %v126_v16, %v125_v14  ;;  %v990_v25 = vpack.c.bf16 %v144_v18, %v143_v17  ;;  %v157_v27 = vld [vmem:[%s1715_s3 + $0x110] sm:$0xff]  ;;  %v59_v18 = vlaneseq }
   0x7   :  { %983 = vmatprep.subr.bf16.mxu0 %v982_v10  ;;  %v156_v21 = vld [vmem:[%s1715_s3 + $0x108] sm:$0xff]  ;;  %v127_v24 = vld [vmem:[%s1715_s3 + $0x20] sm:$0xff]  ;;  %v158_v28 = vld [vmem:[%s1715_s3 + $0x118] sm:$0xff] }
   0x8   :  { %985 = vmatpush3.bf16.msra.mxu0 %v984_v11  ;;  %v1014_v23 = vpack.c.bf16 %v156_v21, %v155_v20  ;;  %v128_v26 = vld [vmem:[%s1715_s3 + $0x28] sm:$0xff]  ;;  %v53_v29 = vld [vmem:[%s1714_s2 + $0x18] sm:$0xff]  ;;  %v145_v30 = vld [vmem:[%s1715_s3 + $0xb0] sm:$0xff]  ;;  %v1018_v32 = vpack.c.bf16 %v158_v28, %v157_v27 }
   0x9   :  { %987 = vmatprep.subr.bf16.mxu0 %v986_v15  ;;  %v146_v31 = vld [vmem:[%s1715_s3 + $0xb8] sm:$0xff]  ;;  %v52_v33 = vld [vmem:[%s1714_s2 + $0x10] sm:$0xff]  ;;  %v159_v34 = vld [vmem:[%s1715_s3 + $0x120] sm:$0xff]  ;;  %v992_v36 = vpack.c.bf16 %v128_v26, %v127_v24 }
   0xa   :  { %83 = vperm.xlu1 %1116, %v49_v9   ;;  %106 = vperm.xlu0 %1115, %v51_v19   ;;  %v160_v35 = vld [vmem:[%s1715_s3 + $0x128] sm:$0xff]  ;;  %v994_v37 = vpack.c.bf16 %v146_v31, %v145_v30  ;;  %v129_v38 = vld [vmem:[%s1715_s3 + $0x30] sm:$0xff]  ;;  %v130_v39 = vld [vmem:[%s1715_s3 + $0x38] sm:$0xff]  ;;  %v1365_v19 = vshrl.u32 %v59_v18, 7 }
   0xb   :  { %1015 = vmatprep.subr.bf16.mxu1 %v1014_v23  ;;  %v147_v40 = vld [vmem:[%s1715_s3 + $0xc0] sm:$0xff]  ;;  %v1022_v41 = vpack.c.bf16 %v160_v35, %v159_v34  ;;  %v148_v42 = vld [vmem:[%s1715_s3 + $0xc8] sm:$0xff]  ;;  %v161_v43 = vld [vmem:[%s1715_s3 + $0x130] sm:$0xff]  ;;  %v996_v45 = vpack.c.bf16 %v130_v39, %v129_v38 }
   0xc   :  { %989 = vmatpush3.bf16.msra.mxu0 %v988_v22  ;;  %1017 = vmatpush3.bf16.msra.mxu1 %v1014_v23  ;;  %v162_v44 = vld [vmem:[%s1715_s3 + $0x138] sm:$0xff]  ;;  %v998_v46 = vpack.c.bf16 %v148_v42, %v147_v40  ;;  %v131_v47 = vld [vmem:[%s1715_s3 + $0x40] sm:$0xff]  ;;  %v132_v48 = vld [vmem:[%s1715_s3 + $0x48] sm:$0xff]  ;;  %vm61_vm0 = vcmp.lt.s32.totalorder %v1365_v19, 1  ;;  %vm94_vm1 = vcmp.lt.s32.totalorder %v1365_v19, 7 }
   0xd   :  { %991 = vmatprep.subr.bf16.mxu0 %v990_v25  ;;  %1019 = vmatprep.subr.bf16.mxu1 %v1018_v32  ;;  %v149_v49 = vld [vmem:[%s1715_s3 + $0xd0] sm:$0xff]  ;;  %v1026_v50 = vpack.c.bf16 %v162_v44, %v161_v43  ;;  %v150_v51 = vld [vmem:[%s1715_s3 + $0xd8] sm:$0xff]  ;;  %v163_v52 = vld [vmem:[%s1715_s3 + $0x140] sm:$0xff]  ;;  %v1000_v54 = vpack.c.bf16 %v132_v48, %v131_v47 }
   0xe   :  { %116 = vperm.xlu1 %1116, %v53_v29   ;;  %111 = vperm.xlu0 %1115, %v52_v33   ;;  %v164_v53 = vld [vmem:[%s1715_s3 + $0x148] sm:$0xff]  ;;  %v133_v55 = vld [vmem:[%s1715_s3 + $0x50] sm:$0xff]  ;;  %v1002_v56 = vpack.c.bf16 %v150_v51, %v149_v49  ;;  %v134_v57 = vld [vmem:[%s1715_s3 + $0x58] sm:$0xff] }
   0xf   :  { %v151_v58 = vld [vmem:[%s1715_s3 + $0xe0] sm:$0xff]  ;;  %v1030_v59 = vpack.c.bf16 %v164_v53, %v163_v52  ;;  %v152_v61 = vld [vmem:[%s1715_s3 + $0xe8] sm:$0xff]  ;;  %v165_v62 = vld [vmem:[%s1715_s3 + $0x150] sm:$0xff]  ;;  %v1004_v0 = vpack.c.bf16 %v134_v57, %v133_v55 }
  0x10   :  { %993 = vmatpush3.bf16.msra.mxu0 %v992_v36  ;;  %1021 = vmatpush3.bf16.msra.mxu1 %v1018_v32  ;;  %v1323_v60 = vld [vmem:[%s1716_s0] sm:$0xff]  ;;  %v166_v63 = vld [vmem:[%s1715_s3 + $0x158] sm:$0xff]  ;;  %v1006_v1 = vpack.c.bf16 %v152_v61, %v151_v58  ;;  %v136_v3 = vld [vmem:[%s1715_s3 + $0x68] sm:$0xff] }
  0x11   :  { %995 = vmatprep.subr.bf16.mxu0 %v994_v37  ;;  %1023 = vmatprep.subr.bf16.mxu1 %v1022_v41  ;;  %v135_v2 = vld [vmem:[%s1715_s3 + $0x60] sm:$0xff]  ;;  %v153_v4 = vld [vmem:[%s1715_s3 + $0xf0] sm:$0xff]  ;;  %v1034_v5 = vpack.c.bf16 %v166_v63, %v165_v62  ;;  %v154_v6 = vld [vmem:[%s1715_s3 + $0xf8] sm:$0xff]  ;;  %v55_v21 = vrot.slane %v1323_v60, 7  ;;  %v90_v25 = vrot.slane %v1323_v60, 1 }
  0x12   :  { %241 = vmatprep.mubr.f32.mxu0 %v1323_v60  ;;  %v167_v7 = vld [vmem:[%s1715_s3 + $0x160] sm:$0xff]  ;;  %v168_v8 = vld [vmem:[%s1715_s3 + $0x168] sm:$0xff]  ;;  %v1008_v9 = vpack.c.bf16 %v136_v3, %v135_v2  ;;  %v1010_v10 = vpack.c.bf16 %v154_v6, %v153_v4  ;;  %v137_v11 = vld [vmem:[%s1715_s3 + $0x70] sm:$0xff] }
  0x13   :  { %v138_v12 = vld [vmem:[%s1715_s3 + $0x78] sm:$0xff]  ;;  %v1038_v13 = vpack.c.bf16 %v168_v8, %v167_v7  ;;  %v169_v14 = vld [vmem:[%s1715_s3 + $0x170] sm:$0xff]  ;;  %v1378_v23 = vld [vmem:[%s1716_s0 + $0x8] sm:$0xff] }
  0x14   :  { %997 = vmatpush3.bf16.msra.mxu0 %v996_v45  ;;  %1025 = vmatpush3.bf16.msra.mxu1 %v1022_v41  ;;  %v170_v15 = vld [vmem:[%s1715_s3 + $0x178] sm:$0xff]  ;;  %v1012_v16 = vpack.c.bf16 %v138_v12, %v137_v11  ;;  %v91_v26 = vrot.slane %v1378_v23, 1  ;;  %v1387_v27 = vld [vmem:[%s1716_s0 + $0x10] sm:$0xff]  ;;  %v56_v29 = vrot.slane %v1378_v23, 7  ;;  %v776_v61 = vld [vmem:[%s1717_s4] ss:$0 sm:$0xff] }
  0x15   :  { %999 = vmatprep.subr.bf16.mxu0 %v998_v46  ;;  %1027 = vmatprep.subr.bf16.mxu1 %v1026_v50  ;;  %v1042_v17 = vpack.c.bf16 %v170_v15, %v169_v14  ;;  %v1370_v20 = vld [vmem:[%s1716_s0 + $0x18] sm:$0xff]  ;;  %v57_v32 = vrot.slane %v1387_v27, 7  ;;  %v92_v35 = vrot.slane %v1387_v27, 1  ;;  %s1122_s4 = smov 8  }
  0x16   :  { %v58_v22 = vrot.slane %v1370_v20, 7  ;;  %v64_v33 = vsel %vm61_vm0, %v55_v21, %v56_v29  ;;  %v97_v34 = vsel %vm94_vm1, %v90_v25, %v91_v26  ;;  %v93_v42 = vrot.slane %v1370_v20, 1 }
  0x17   :  { %v63_v40 = vsel %vm61_vm0, %v56_v29, %v57_v32  ;;  %v96_v41 = vsel %vm94_vm1, %v91_v26, %v92_v35 }
  0x18   :  { %1001 = vmatpush3.bf16.msra.mxu0 %v1000_v54  ;;  %1029 = vmatpush3.bf16.msra.mxu1 %v1026_v50  ;;  %v65_v24 = vsel %vm61_vm0, %v58_v22, %v55_v21  ;;  %v62_v47 = vsel %vm61_vm0, %v57_v32, %v58_v22  ;;  %v98_v48 = vsel %vm94_vm1, %v93_v42, %v90_v25 }
  0x19   :  { %1003 = vmatprep.subr.bf16.mxu0 %v1002_v56  ;;  %1031 = vmatprep.subr.bf16.mxu1 %v1030_v59  ;;  %v95_v49 = vsel %vm94_vm1, %v92_v35, %v93_v42 }
  0x1c   :  { %1005 = vmatpush3.bf16.msra.mxu0 %v1004_v0  ;;  %1033 = vmatpush3.bf16.msra.mxu1 %v1030_v59 }
  0x1d   :  { %1007 = vmatprep.subr.bf16.mxu0 %v1006_v1  ;;  %1035 = vmatprep.subr.bf16.mxu1 %v1034_v5 }
  0x20   :  { %1009 = vmatpush3.bf16.msra.mxu0 %v1008_v9  ;;  %1037 = vmatpush3.bf16.msra.mxu1 %v1034_v5 }
  0x21   :  { %1011 = vmatprep.subr.bf16.mxu0 %v1010_v10  ;;  %1039 = vmatprep.subr.bf16.mxu1 %v1038_v13 }
  0x24   :  { %1013 = vmatpush3.bf16.msra.mxu0 %v1012_v16  ;;  %1041 = vmatpush3.bf16.msra.mxu1 %v1038_v13 }
  0x25   :  { %1043 = vmatprep.subr.bf16.mxu1 %v1042_v17 }
  0x28   :  { %1045 = vmatpush3.bf16.msra.mxu1 %v1042_v17 }
  0x81   :  { %v1390_v28 = vpop.permute.xlu1 %78  ;;  %v1393_v30 = vpop.permute.xlu0 %68 }
  0x82   :  { %v86_v31 = vmul.f32 %v1393_v30, %v65_v24  ;;  %v88_v45 = vmul.f32 %v1390_v28, %v63_v40 }
  0x84   :  { %242 = vmatmul.mubr.f32.vlgmr.msra.gmra.mrb[0].mxu0 %v86_v31 }
  0x85   :  { %v1402_v36 = vpop.permute.xlu1 %101  ;;  %v1404_v37 = vpop.permute.xlu0 %73  ;;  %246 = vmatprep.mubr.f32.mxu0 %v1378_v23 }
  0x86   :  { %v87_v38 = vmul.f32 %v1404_v37, %v64_v33  ;;  %v119_v39 = vmul.f32 %v1402_v36, %v97_v34 }
  0x88   :  { %247 = vmatmul.mubr.f32.gmra.mrb[2].mxu0 %v87_v38  ;;  %938 = vmatprep.mubr.f32.mxu1 %v119_v39 }
  0x89   :  { %v1414_v43 = vpop.permute.xlu1 %83  ;;  %v1416_v44 = vpop.permute.xlu0 %106  ;;  %251 = vmatprep.mubr.f32.mxu0 %v1387_v27 }
  0x8a   :  { %v120_v46 = vmul.f32 %v1416_v44, %v96_v41  ;;  %v89_v52 = vmul.f32 %v1414_v43, %v62_v47 }
  0x8c   :  { %252 = vmatmul.mubr.f32.gmra.mrb[4].mxu0 %v88_v45  ;;  %939 = vmatmul.mubr.f32.vlgmr.msra.gmra.mrb[0].mxu1 %v120_v46 }
  0x8d   :  { %v1427_v50 = vpop.permute.xlu1 %116  ;;  %v1429_v51 = vpop.permute.xlu0 %111  ;;  %256 = vmatprep.mubr.f32.mxu0 %v1370_v20 }
  0x8e   :  { %v122_v53 = vmul.f32 %v1427_v50, %v98_v48  ;;  %v121_v54 = vmul.f32 %v1429_v51, %v95_v49 }
  0x90   :  { %257 = vmatmul.mubr.f32.gmra.mrb[6].mxu0 %v89_v52  ;;  %941 = vmatprep.mubr.f32.mxu1 %v121_v54 }
  0x91   :  { %942 = vmatmul.mubr.f32.gmra.mrb[2].mxu1 %v122_v53 }
 0x157   :  { %v810_v55 = vpop.f32.mrb[0].mxu0 }
 0x158   :  { %v811_v56 = vpop.f32.mrb[1].mxu0 }
 0x159   :  { %v812_v57 = vadd.f32 %v811_v56, %v810_v55 }
 0x15b   :  { %v813_v58 = vpop.f32.mrb[2].mxu0  ;;  %v244_v2 = vadd.f32 %v812_v57, %v776_v61 }
 0x15c   :  { %v814_v59 = vpop.f32.mrb[3].mxu0 }
 0x15d   :  { %v815_v62 = vadd.f32 %v814_v59, %v813_v58  ;;  %v479_v59 = vld [vmem:[%s1718_s8 + $0x80] sm:$0xff] }
 0x15f   :  { %v816_v63 = vpop.f32.mrb[4].mxu0  ;;  %v249_v0 = vadd.f32 %v815_v62, %v776_v61  ;;  %v940_v1 = vpop.f32.mrb[0].mxu1 }
 0x160   :  { %v817_v3 = vpop.f32.mrb[5].mxu0  ;;  %v328_v4 = vpop.f32.mrb[1].mxu1 }
 0x161   :  { %v1438_v5 = vadd.f32 %v940_v1, %v249_v0  ;;  %v818_v6 = vadd.f32 %v817_v3, %v816_v63  ;;  %v1440_v7 = vadd.f32 %v328_v4, %v244_v2  ;;  %v463_v63 = vld [vmem:[%s1718_s8] sm:$0xff]  ;;  %v464_v0 = vld [vmem:[%s1718_s8 + $0x8] sm:$0xff] }
 0x162   :  { %v1048_v1 = vpack.c.bf16 %v464_v0, %v463_v63  ;;  %v495_v2 = vld [vmem:[%s1718_s8 + $0x100] sm:$0xff]  ;;  %v496_v3 = vld [vmem:[%s1718_s8 + $0x108] sm:$0xff]  ;;  %v490_v63 = vld [vmem:[%s1718_s8 + $0xd8] sm:$0xff] }
 0x163   :  { %v819_v8 = vpop.f32.mrb[6].mxu0  ;;  %v254_v9 = vadd.f32 %v818_v6, %v776_v61  ;;  %v372_v10 = vmul.f32 %v1438_v5, %v1438_v5  ;;  %v371_v11 = vmul.f32 %v1440_v7, %v1440_v7  ;;  %v349_v16 = vadd.f32 %v1438_v5, %v1440_v7  ;;  %v481_v6 = vld [vmem:[%s1718_s8 + $0x90] sm:$0xff] }
 0x164   :  { %v820_v12 = vpop.f32.mrb[7].mxu0  ;;  %v943_v13 = vpop.f32.mrb[2].mxu1  ;;  %v1078_v4 = vpack.c.bf16 %v496_v3, %v495_v2  ;;  %v473_v0 = vld [vmem:[%s1718_s8 + $0x50] sm:$0xff]  ;;  %v474_v2 = vld [vmem:[%s1718_s8 + $0x58] sm:$0xff] }
 0x165   :  { %v821_v14 = vadd.f32 %v820_v12, %v819_v8  ;;  %v338_v15 = vpop.f32.mrb[3].mxu1  ;;  %v375_v21 = vadd.f32 %v372_v10, %v371_v11  ;;  %v482_v8 = vld [vmem:[%s1718_s8 + $0x98] sm:$0xff]  ;;  %v465_v10 = vld [vmem:[%s1718_s8 + $0x10] sm:$0xff] }
 0x166   :  { %v1448_v17 = vadd.f32 %v338_v15, %v254_v9  ;;  %1079 = vmatprep.subr.bf16.mxu1 %v1078_v4  ;;  %v1050_v9 = vpack.c.bf16 %v482_v8, %v481_v6  ;;  %v466_v11 = vld [vmem:[%s1718_s8 + $0x18] sm:$0xff]  ;;  %v497_v12 = vld [vmem:[%s1718_s8 + $0x110] sm:$0xff]  ;;  %v1068_v6 = vpack.c.bf16 %v474_v2, %v473_v0  ;;  %v429_v0 = vstv %s1721_s7 }
 0x167   :  { %v259_v18 = vadd.f32 %v821_v14, %v776_v61  ;;  %v480_v61 = vld [vmem:[%s1718_s8 + $0x88] sm:$0xff]  ;;  %1081 = vmatpush3.bf16.msra.mxu1 %v1078_v4  ;;  %v1052_v14 = vpack.c.bf16 %v466_v11, %v465_v10  ;;  %v498_v15 = vld [vmem:[%s1718_s8 + $0x118] sm:$0xff]  ;;  %v505_v3 = vld [vmem:[%s1718_s8 + $0x150] sm:$0xff] }
 0x168   :  { %v350_v22 = vadd.f32 %v349_v16, %v1448_v17  ;;  %v373_v24 = vmul.f32 %v1448_v17, %v1448_v17  ;;  %v1046_v62 = vpack.c.bf16 %v480_v61, %v479_v59  ;;  %v504_v59 = vld [vmem:[%s1718_s8 + $0x148] sm:$0xff]  ;;  %v506_v4 = vld [vmem:[%s1718_s8 + $0x158] sm:$0xff]  ;;  %v475_v11 = vld [vmem:[%s1718_s8 + $0x60] sm:$0xff] }
 0x169   :  { %v1453_v25 = vadd.f32 %v943_v13, %v259_v18  ;;  %v1082_v18 = vpack.c.bf16 %v498_v15, %v497_v12  ;;  %v1098_v8 = vpack.c.bf16 %v506_v4, %v505_v3  ;;  %v492_v10 = vld [vmem:[%s1718_s8 + $0xe8] sm:$0xff] }
 0x16a   :  { %v376_v26 = vadd.f32 %v375_v21, %v373_v24  ;;  %1047 = vmatprep.subr.bf16.mxu0 %v1046_v62  ;;  %v484_v24 = vld [vmem:[%s1718_s8 + $0xa8] sm:$0xff]  ;;  %v489_v62 = vld [vmem:[%s1718_s8 + $0xd0] sm:$0xff] }
 0x16b   :  { %v374_v29 = vmul.f32 %v1453_v25, %v1453_v25  ;;  %v351_v31 = vadd.f32 %v350_v22, %v1453_v25  ;;  %1049 = vmatpush3.bf16.msra.mxu0 %v1048_v1  ;;  %v483_v22 = vld [vmem:[%s1718_s8 + $0xa0] sm:$0xff]  ;;  %1083 = vmatprep.subr.bf16.mxu1 %v1082_v18  ;;  %v1066_v1 = vpack.c.bf16 %v490_v63, %v489_v62  ;;  %v508_v15 = vld [vmem:[%s1718_s8 + $0x168] sm:$0xff] }
 0x16c   :  { %1051 = vmatprep.subr.bf16.mxu0 %v1050_v9  ;;  %1085 = vmatpush3.bf16.msra.mxu1 %v1082_v18  ;;  %v491_v9 = vld [vmem:[%s1718_s8 + $0xe0] sm:$0xff] }
 0x16d   :  { %v352_v32 = vrot.slane %v351_v31, 4  ;;  %v377_v33 = vadd.f32 %v376_v26, %v374_v29  ;;  %v1054_v29 = vpack.c.bf16 %v484_v24, %v483_v22  ;;  %v1070_v12 = vpack.c.bf16 %v492_v10, %v491_v9  ;;  %v493_v22 = vld [vmem:[%s1718_s8 + $0xf0] sm:$0xff]  ;;  %v494_v24 = vld [vmem:[%s1718_s8 + $0xf8] sm:$0xff] }
 0x16f   :  { %v353_v34 = vadd.f32 %v352_v32, %v351_v31  ;;  %v378_v35 = vrot.slane %v377_v33, 4  ;;  %1053 = vmatpush3.bf16.msra.mxu0 %v1052_v14  ;;  %v467_v31 = vld [vmem:[%s1718_s8 + $0x20] sm:$0xff]  ;;  %v468_v32 = vld [vmem:[%s1718_s8 + $0x28] sm:$0xff] }
 0x170   :  { %1055 = vmatprep.subr.bf16.mxu0 %v1054_v29  ;;  %v507_v14 = vld [vmem:[%s1718_s8 + $0x160] sm:$0xff]  ;;  %v1074_v29 = vpack.c.bf16 %v494_v24, %v493_v22 }
 0x171   :  { %v354_v38 = vrot.slane %v353_v34, 2  ;;  %v379_v39 = vadd.f32 %v378_v35, %v377_v33  ;;  %v499_v33 = vld [vmem:[%s1718_s8 + $0x120] sm:$0xff]  ;;  %v500_v35 = vld [vmem:[%s1718_s8 + $0x128] sm:$0xff]  ;;  %v1102_v18 = vpack.c.bf16 %v508_v15, %v507_v14 }
 0x173   :  { %v355_v40 = vadd.f32 %v354_v38, %v353_v34  ;;  %v380_v41 = vrot.slane %v379_v39, 2  ;;  %v1056_v34 = vpack.c.bf16 %v468_v32, %v467_v31  ;;  %v1086_v38 = vpack.c.bf16 %v500_v35, %v499_v33  ;;  %v477_v31 = vld [vmem:[%s1718_s8 + $0x70] sm:$0xff]  ;;  %v478_v32 = vld [vmem:[%s1718_s8 + $0x78] sm:$0xff] }
 0x174   :  { %v509_v33 = vld [vmem:[%s1718_s8 + $0x170] sm:$0xff]  ;;  %v510_v35 = vld [vmem:[%s1718_s8 + $0x178] sm:$0xff] }
 0x175   :  { %v356_v42 = vrot.slane %v355_v40, 1  ;;  %v381_v45 = vadd.f32 %v380_v41, %v379_v39  ;;  %1057 = vmatpush3.bf16.msra.mxu0 %v1056_v34  ;;  %v485_v39 = vld [vmem:[%s1718_s8 + $0xb0] sm:$0xff]  ;;  %1087 = vmatprep.subr.bf16.mxu1 %v1086_v38  ;;  %v1076_v34 = vpack.c.bf16 %v478_v32, %v477_v31 }
 0x176   :  { %1089 = vmatpush3.bf16.msra.mxu1 %v1086_v38  ;;  %v1106_v38 = vpack.c.bf16 %v510_v35, %v509_v33 }
 0x177   :  { %v357_v46 = vadd.f32 %v356_v42, %v355_v40  ;;  %v382_v47 = vrot.slane %v381_v45, 1  ;;  %v486_v40 = vld [vmem:[%s1718_s8 + $0xb8] sm:$0xff]  ;;  %v469_v42 = vld [vmem:[%s1718_s8 + $0x30] sm:$0xff] }
 0x178   :  { %v1058_v41 = vpack.c.bf16 %v486_v40, %v485_v39 }
 0x179   :  { %358 = vrot.lane.b32.xlu0 %v357_v46, %s1122_s4  ;;  %v383_v48 = vadd.f32 %v382_v47, %v381_v45  ;;  %v470_v45 = vld [vmem:[%s1718_s8 + $0x38] sm:$0xff] }
 0x17a   :  { %v1060_v47 = vpack.c.bf16 %v470_v45, %v469_v42  ;;  %1059 = vmatprep.subr.bf16.mxu0 %v1058_v41 }
 0x17b   :  { %384 = vrot.lane.b32.xlu1 %v383_v48, %s1122_s4 }
 0x17c   :  { %1061 = vmatpush3.bf16.msra.mxu0 %v1060_v47 }
 0x1eb   :  { %v359_v49 = vpop.permute.xlu0 %358 }
 0x1ec   :  { %v360_v52 = vadd.f32 %v359_v49, %v357_v46  ;;  %v501_v46 = vld [vmem:[%s1718_s8 + $0x130] sm:$0xff] }
 0x1ed   :  { %v385_v53 = vpop.permute.xlu1 %384 }
 0x1ee   :  { %v386_v54 = vadd.f32 %v385_v53, %v383_v48  ;;  %361 = vrot.lane.b32.xlu0 %v360_v52, %s1123_s24  ;;  %v502_v48 = vld [vmem:[%s1718_s8 + $0x138] sm:$0xff]  ;;  %v488_v53 = vld [vmem:[%s1718_s8 + $0xc8] sm:$0xff] }
 0x1ef   :  { %v1090_v49 = vpack.c.bf16 %v502_v48, %v501_v46 }
 0x1f0   :  { %387 = vrot.lane.b32.xlu1 %v386_v54, %s1123_s24 }
 0x1f1   :  { %1091 = vmatprep.subr.bf16.mxu1 %v1090_v49 }
 0x1f2   :  { %1093 = vmatpush3.bf16.msra.mxu1 %v1090_v49 }
 0x260   :  { %v362_v55 = vpop.permute.xlu0 %361 }
 0x261   :  { %v363_v56 = vadd.f32 %v362_v55, %v360_v52  ;;  %v487_v52 = vld [vmem:[%s1718_s8 + $0xc0] sm:$0xff] }
 0x262   :  { %v388_v57 = vpop.permute.xlu1 %387  ;;  %v471_v55 = vld [vmem:[%s1718_s8 + $0x40] sm:$0xff] }
 0x263   :  { %v389_v58 = vadd.f32 %v388_v57, %v386_v54  ;;  %364 = vrot.lane.b32.xlu0 %v363_v56, %s1124_s25  ;;  %v1062_v54 = vpack.c.bf16 %v488_v53, %v487_v52  ;;  %v503_v57 = vld [vmem:[%s1718_s8 + $0x140] sm:$0xff]  ;;  %v1622_v53 = vsub.s32 0, %v1365_v19 }
 0x264   :  { %v1094_v61 = vpack.c.bf16 %v504_v59, %v503_v57  ;;  %v347_v52 = vld [vmem:[%s1719_s5] sm:$0x1] }
 0x265   :  { %390 = vrot.lane.b32.xlu1 %v389_v58, %s1124_s25  ;;  %1063 = vmatprep.subr.bf16.mxu0 %v1062_v54 }
 0x266   :  { %1095 = vmatprep.subr.bf16.mxu1 %v1094_v61 }
 0x267   :  { %1097 = vmatpush3.bf16.msra.mxu1 %v1094_v61 }
 0x268   :  { %1099 = vmatprep.subr.bf16.mxu1 %v1098_v8 }
 0x26b   :  { %1101 = vmatpush3.bf16.msra.mxu1 %v1098_v8 }
 0x26c   :  { %1103 = vmatprep.subr.bf16.mxu1 %v1102_v18 }
 0x26f   :  { %1105 = vmatpush3.bf16.msra.mxu1 %v1102_v18 }
 0x270   :  { %1107 = vmatprep.subr.bf16.mxu1 %v1106_v38 }
 0x273   :  { %1109 = vmatpush3.bf16.msra.mxu1 %v1106_v38 }
 0x2d5   :  { %v365_v13 = vpop.permute.xlu0 %364 }
 0x2d6   :  { %v1500_v16 = vadd.f32 %v365_v13, %v363_v56  ;;  %v472_v56 = vld [vmem:[%s1718_s8 + $0x48] sm:$0xff] }
 0x2d7   :  { %v391_v21 = vpop.permute.xlu1 %390  ;;  %v476_v13 = vld [vmem:[%s1718_s8 + $0x68] sm:$0xff] }
 0x2d8   :  { %v1508_v26 = vadd.f32 %v391_v21, %v389_v58  ;;  %367 = vrot.lane.b32.xlu0 %v1500_v16, %s1125_s15  ;;  %v1064_v58 = vpack.c.bf16 %v472_v56, %v471_v55  ;;  %v1072_v21 = vpack.c.bf16 %v476_v13, %v475_v11 }
 0x2da   :  { %393 = vrot.lane.b32.xlu1 %v1508_v26, %s1125_s15  ;;  %1065 = vmatpush3.bf16.msra.mxu0 %v1064_v58 }
 0x2db   :  { %1067 = vmatprep.subr.bf16.mxu0 %v1066_v1 }
 0x2de   :  { %1069 = vmatpush3.bf16.msra.mxu0 %v1068_v6 }
 0x2df   :  { %1071 = vmatprep.subr.bf16.mxu0 %v1070_v12 }
 0x2e2   :  { %1073 = vmatpush3.bf16.msra.mxu0 %v1072_v21 }
 0x2e3   :  { %1075 = vmatprep.subr.bf16.mxu0 %v1074_v29 }
 0x2e6   :  { %1077 = vmatpush3.bf16.msra.mxu0 %v1076_v34 }
 0x34a   :  { %v368_v39 = vpop.permute.xlu0 %367 }
 0x34b   :  { %v369_v40 = vadd.f32 %v368_v39, %v1500_v16  ;;  %v348_v16 = vld [vmem:[%s1720_s6] sm:$0x1] }
 0x34c   :  { %v394_v41 = vpop.permute.xlu1 %393 }
 0x34d   :  { %v370_v42 = vmul.f32 0.001953125, %v369_v40  ;;  %v395_v45 = vadd.f32 %v394_v41, %v1508_v26 }
 0x34f   :  { %v397_v46 = vmul.f32 %v370_v42, %v370_v42  ;;  %v396_v47 = vmul.f32 0.001953125, %v395_v45 }
 0x351   :  { %v398_v48 = vsub.f32 %v396_v47, %v397_v46  ;;  %v777_v46 = vld [vmem:[%s1722_s9] ss:$0 sm:$0xff] }
 0x353   :  { %v399_v49 = vadd.f32 0.8, %v398_v48 }
 0x355   :  { %1117 = vrsqrt.f32 %v399_v49 }
 0x35f   :  { %v1118_v54 = vpop.eup %1117 }
 0x360   :  { %v401_v55 = vmul.f32 %v1118_v54, %v347_v52 }
 0x362   :  { %v402_v56 = vmul.f32 %v401_v55, %v370_v42  ;;  %v408_v26 = vrot.slane %v401_v55, %v1622_v53 }
 0x364   :  { %v403_v57 = vsub.f32 %v348_v16, %v402_v56  ;;  %v410_v58 = vmul.f32 %v408_v26, %v1440_v7  ;;  %v411_v59 = vmul.f32 %v408_v26, %v1438_v5  ;;  %v412_v61 = vmul.f32 %v408_v26, %v1448_v17 }
 0x365   :  { %v413_v62 = vmul.f32 %v408_v26, %v1453_v25 }
 0x366   :  { %v418_v63 = vrot.slane %v403_v57, %v1622_v53 }
 0x368   :  { %v420_v1 = vadd.f32 %v418_v63, %v410_v58  ;;  %v421_v2 = vadd.f32 %v418_v63, %v411_v59  ;;  %v422_v3 = vadd.f32 %v418_v63, %v412_v61  ;;  %v423_v4 = vadd.f32 %v418_v63, %v413_v62 }
 0x36a   :  { %vm425_vm2 = vcmp.ge.f32.partialorder %v420_v1, 0.0  ;;  %vm427_vm3 = vcmp.ge.f32.partialorder %v422_v3, 0.0  ;;  %vm428_vm4 = vcmp.ge.f32.partialorder %v423_v4, 0.0  ;;  %v430_v7 = vmul.f32 %v429_v0, %v420_v1 }
 0x36b   :  { %v431_v6 = vmul.f32 %v429_v0, %v421_v2  ;;  %v432_v5 = vmul.f32 %v429_v0, %v422_v3  ;;  %v433_v8 = vmul.f32 %v429_v0, %v423_v4  ;;  %vm426_vm5 = vcmp.ge.f32.partialorder %v421_v2, 0.0 }
 0x36c   :  { %v434_v17 = vsel %vm425_vm2, %v420_v1, %v430_v7 }
 0x36d   :  { %v436_v25 = vsel %vm427_vm3, %v422_v3, %v432_v5  ;;  %v437_v9 = vsel %vm428_vm4, %v423_v4, %v433_v8  ;;  %v439_v10 = vrot.slane %v434_v17, 7  ;;  %v451_v11 = vrot.slane %v434_v17, 1  ;;  %581 = vmatprep.mubr.f32.mxu0 %v434_v17 }
 0x36e   :  { %v442_v12 = vrot.slane %v437_v9, 7  ;;  %v435_v13 = vsel %vm426_vm5, %v421_v2, %v431_v6  ;;  %v453_v14 = vrot.slane %v436_v25, 1  ;;  %v454_v15 = vrot.slane %v437_v9, 1 }
 0x36f   :  { %v452_v18 = vrot.slane %v435_v13, 1  ;;  %v440_v21 = vrot.slane %v435_v13, 7  ;;  %v441_v38 = vrot.slane %v436_v25, 7 }
 0x370   :  { %v446_v22 = vsel %vm61_vm0, %v442_v12, %v439_v10  ;;  %v455_v32 = vsel %vm94_vm1, %v453_v14, %v454_v15  ;;  %v458_v39 = vsel %vm94_vm1, %v454_v15, %v451_v11 }
 0x371   :  { %v447_v24 = vmul.f32 %v446_v22, %v1393_v30  ;;  %v457_v29 = vsel %vm94_vm1, %v451_v11, %v452_v18  ;;  %v456_v31 = vsel %vm94_vm1, %v452_v18, %v453_v14  ;;  %v445_v35 = vsel %vm61_vm0, %v439_v10, %v440_v21 }
 0x372   :  { %v459_v33 = vmul.f32 %v457_v29, %v1402_v36  ;;  %v460_v34 = vmul.f32 %v456_v31, %v1416_v44  ;;  %v461_v30 = vmul.f32 %v455_v32, %v1429_v51  ;;  %v448_v40 = vmul.f32 %v445_v35, %v1404_v37 }
 0x373   :  { %582 = vmatmul.mubr.f32.vlgmr.msra.gmra.mrb[8].mxu0 %v447_v24  ;;  %v444_v36 = vsel %vm61_vm0, %v440_v21, %v441_v38  ;;  %v462_v44 = vmul.f32 %v458_v39, %v1427_v50  ;;  %v443_v51 = vsel %vm61_vm0, %v441_v38, %v442_v12 }
 0x374   :  { %976 = vmatprep.mubr.f32.mxu1 %v459_v33  ;;  %586 = vmatprep.mubr.f32.mxu0 %v435_v13  ;;  %v449_v41 = vmul.f32 %v444_v36, %v1390_v28  ;;  %v450_v42 = vmul.f32 %v443_v51, %v1414_v43 }
 0x375   :  { %977 = vmatmul.mubr.f32.vlgmr.msra.gmra.mrb[4].mxu1 %v460_v34 }
 0x376   :  { %979 = vmatprep.mubr.f32.mxu1 %v461_v30 }
 0x377   :  { %587 = vmatmul.mubr.f32.gmra.mrb[10].mxu0 %v448_v40 }
 0x378   :  { %591 = vmatprep.mubr.f32.mxu0 %v436_v25 }
 0x379   :  { %980 = vmatmul.mubr.f32.gmra.mrb[6].mxu1 %v462_v44 }
 0x37b   :  { %592 = vmatmul.mubr.f32.gmra.mrb[12].mxu0 %v449_v41 }
 0x37c   :  { %596 = vmatprep.mubr.f32.mxu0 %v437_v9 }
 0x37f   :  { %597 = vmatmul.mubr.f32.gmra.mrb[14].mxu0 %v450_v42 }
 0x446   :  { %v874_v37 = vpop.f32.mrb[8].mxu0 }
 0x447   :  { %v875_v45 = vpop.f32.mrb[9].mxu0 }
 0x448   :  { %v876_v47 = vadd.f32 %v875_v45, %v874_v37  ;;  %v978_v50 = vpop.f32.mrb[4].mxu1 }
 0x449   :  { %v668_v48 = vpop.f32.mrb[5].mxu1 }
 0x44a   :  { %v584_v49 = vadd.f32 %v876_v47, %v777_v46  ;;  %v877_v52 = vpop.f32.mrb[10].mxu0 }
 0x44b   :  { %v878_v28 = vpop.f32.mrb[11].mxu0 }
 0x44c   :  { %v1663_v54 = vadd.f32 %v668_v48, %v584_v49  ;;  %v879_v19 = vadd.f32 %v878_v28, %v877_v52  ;;  %v981_v55 = vpop.f32.mrb[6].mxu1 }
 0x44d   :  { %v678_v16 = vpop.f32.mrb[7].mxu1 }
 0x44e   :  { %v589_v56 = vadd.f32 %v879_v19, %v777_v46  ;;  %v880_v43 = vpop.f32.mrb[12].mxu0  ;;  %v711_v2 = vmul.f32 %v1663_v54, %v1663_v54  ;;  %v687_v19 = vld [vmem:[%s1723_s10] sm:$0x1] }
 0x44f   :  { %v881_v26 = vpop.f32.mrb[13].mxu0 }
 0x450   :  { %v1665_v57 = vadd.f32 %v978_v50, %v589_v56  ;;  %v882_v58 = vadd.f32 %v881_v26, %v880_v43  ;;  %v688_v56 = vld [vmem:[%s1724_s11] sm:$0x1] }
 0x452   :  { %v594_v59 = vadd.f32 %v882_v58, %v777_v46  ;;  %v883_v61 = vpop.f32.mrb[14].mxu0  ;;  %v712_v63 = vmul.f32 %v1665_v57, %v1665_v57  ;;  %v689_v3 = vadd.f32 %v1665_v57, %v1663_v54 }
 0x453   :  { %v884_v62 = vpop.f32.mrb[15].mxu0 }
 0x454   :  { %v1669_v0 = vadd.f32 %v678_v16, %v594_v59  ;;  %v885_v1 = vadd.f32 %v884_v62, %v883_v61  ;;  %v715_v6 = vadd.f32 %v712_v63, %v711_v2 }
 0x456   :  { %v713_v4 = vmul.f32 %v1669_v0, %v1669_v0  ;;  %v599_v7 = vadd.f32 %v885_v1, %v777_v46  ;;  %v690_v5 = vadd.f32 %v689_v3, %v1669_v0 }
 0x458   :  { %v684_v8 = vadd.f32 %v981_v55, %v599_v7  ;;  %v716_v17 = vadd.f32 %v715_v6, %v713_v4 }
 0x45a   :  { %v691_v25 = vadd.f32 %v690_v5, %v684_v8  ;;  %v714_v9 = vmul.f32 %v684_v8, %v684_v8 }
 0x45c   :  { %v692_v10 = vrot.slane %v691_v25, 4  ;;  %v717_v11 = vadd.f32 %v716_v17, %v714_v9 }
 0x45e   :  { %v693_v12 = vadd.f32 %v692_v10, %v691_v25  ;;  %v718_v13 = vrot.slane %v717_v11, 4 }
 0x460   :  { %v694_v14 = vrot.slane %v693_v12, 2  ;;  %v719_v15 = vadd.f32 %v718_v13, %v717_v11 }
 0x462   :  { %v695_v18 = vadd.f32 %v694_v14, %v693_v12  ;;  %v720_v21 = vrot.slane %v719_v15, 2 }
 0x464   :  { %v696_v22 = vrot.slane %v695_v18, 1  ;;  %v721_v24 = vadd.f32 %v720_v21, %v719_v15 }
 0x466   :  { %v697_v29 = vadd.f32 %v696_v22, %v695_v18  ;;  %v722_v31 = vrot.slane %v721_v24, 1 }
 0x468   :  { %698 = vrot.lane.b32.xlu0 %v697_v29, %s1122_s4  ;;  %v723_v32 = vadd.f32 %v722_v31, %v721_v24 }
 0x46a   :  { %724 = vrot.lane.b32.xlu1 %v723_v32, %s1122_s4 }
 0x4da   :  { %v699_v33 = vpop.permute.xlu0 %698 }
 0x4db   :  { %v700_v34 = vadd.f32 %v699_v33, %v697_v29 }
 0x4dc   :  { %v725_v35 = vpop.permute.xlu1 %724 }
 0x4dd   :  { %v726_v38 = vadd.f32 %v725_v35, %v723_v32  ;;  %701 = vrot.lane.b32.xlu0 %v700_v34, %s1123_s24 }
 0x4df   :  { %727 = vrot.lane.b32.xlu1 %v726_v38, %s1123_s24 }
 0x54f   :  { %v702_v30 = vpop.permute.xlu0 %701 }
 0x550   :  { %v703_v39 = vadd.f32 %v702_v30, %v700_v34 }
 0x551   :  { %v728_v40 = vpop.permute.xlu1 %727 }
 0x552   :  { %v729_v36 = vadd.f32 %v728_v40, %v726_v38  ;;  %704 = vrot.lane.b32.xlu0 %v703_v39, %s1124_s25 }
 0x554   :  { %730 = vrot.lane.b32.xlu1 %v729_v36, %s1124_s25 }
 0x5c4   :  { %v705_v44 = vpop.permute.xlu0 %704 }
 0x5c5   :  { %v706_v41 = vadd.f32 %v705_v44, %v703_v39 }
 0x5c6   :  { %v731_v51 = vpop.permute.xlu1 %730 }
 0x5c7   :  { %v732_v42 = vadd.f32 %v731_v51, %v729_v36  ;;  %707 = vrot.lane.b32.xlu0 %v706_v41, %s1125_s15 }
 0x5c9   :  { %733 = vrot.lane.b32.xlu1 %v732_v42, %s1125_s15 }
 0x639   :  { %v708_v37 = vpop.permute.xlu0 %707 }
 0x63a   :  { %v709_v45 = vadd.f32 %v708_v37, %v706_v41 }
 0x63b   :  { %v734_v46 = vpop.permute.xlu1 %733 }
 0x63c   :  { %v710_v47 = vmul.f32 0.001953125, %v709_v45  ;;  %v735_v50 = vadd.f32 %v734_v46, %v732_v42 }
 0x63e   :  { %v737_v48 = vmul.f32 %v710_v47, %v710_v47  ;;  %v736_v49 = vmul.f32 0.001953125, %v735_v50 }
 0x640   :  { %v738_v52 = vsub.f32 %v736_v49, %v737_v48 }
 0x642   :  { %v739_v28 = vadd.f32 0.8, %v738_v52 }
 0x644   :  { %1119 = vrsqrt.f32 %v739_v28 }
 0x64e   :  { %v1120_v55 = vpop.eup %1119 }
 0x64f   :  { %v741_v16 = vmul.f32 %v1120_v55, %v687_v19 }
 0x651   :  { %v742_v43 = vmul.f32 %v741_v16, %v710_v47  ;;  %v748_v26 = vrot.slane %v741_v16, %v1622_v53 }
 0x653   :  { %v743_v58 = vsub.f32 %v688_v56, %v742_v43  ;;  %v750_v59 = vmul.f32 %v748_v26, %v1663_v54  ;;  %v751_v61 = vmul.f32 %v748_v26, %v1665_v57  ;;  %v752_v62 = vmul.f32 %v748_v26, %v1669_v0 }
 0x654   :  { %v753_v63 = vmul.f32 %v748_v26, %v684_v8 }
 0x655   :  { %v758_v1 = vrot.slane %v743_v58, %v1622_v53 }
 0x657   :  { %v760_v2 = vadd.f32 %v758_v1, %v750_v59  ;;  %v761_v3 = vadd.f32 %v758_v1, %v751_v61  ;;  %v762_v4 = vadd.f32 %v758_v1, %v752_v62  ;;  %v763_v7 = vadd.f32 %v758_v1, %v753_v63 }
 0x659   :  { %v764_v6 = vadd.f32 %v760_v2, %v1323_v60  ;;  %v765_v5 = vadd.f32 %v761_v3, %v1378_v23  ;;  %v766_v17 = vadd.f32 %v762_v4, %v1387_v27  ;;  %v767_v25 = vadd.f32 %v763_v7, %v1370_v20 }
 0x65b   :  { %768 = vst [vmem:[%s1725_s12] sm:$0xff] %v764_v6  ;;  %769 = vst [vmem:[%s1725_s12 + $0x8] sm:$0xff] %v765_v5 }
 0x65c   :  { %770 = vst [vmem:[%s1725_s12 + $0x10] sm:$0xff] %v766_v17  ;;  %771 = vst [vmem:[%s1725_s12 + $0x18] sm:$0xff] %v767_v25 }

</bundles_post_ra>
